<compile_context>
chip_gen: v7x
topology: tpu7x:2x2x1
jax: 0.10.0
libtpu: 0.0.40
codegen_flags: <defaults>
</compile_context>

<pallas_src>
import functools

import jax
import jax.numpy as jnp
from jax import lax
from jax.experimental import pallas as pl
from jax.experimental.pallas import tpu as pltpu


def _is_small_int(g):
    """True if gamma is a static non-negative small integer (multiply-only path)."""
    try:
        return float(g).is_integer() and 0 <= float(g) <= 16
    except TypeError:  # traced value — fall back to the general path
        return False


def _int_pow(x, n):
    """x ** n for a static non-negative integer n, multiplies only (no EUP)."""
    n = int(n)
    if n == 0:
        return jnp.ones_like(x)  # matches torch.pow(x, 0) == 1 even at x == 0
    result = None
    cur = x
    while n:
        if n & 1:
            result = cur if result is None else result * cur
        n >>= 1
        if n:
            cur = cur * cur
    return result


def _asl_kernel(x_ref, tgt_ref, loss_ref, *, gamma_pos, gamma_neg, eps, num_classes):
    # Upcast in VMEM: f32 math regardless of streamed dtype (v5e has no bf16 VPU).
    x = x_ref[...].astype(jnp.float32)               # (TB, C)
    tgt = tgt_ref[...]                               # (TB, 1) i32

    # --- log-softmax over the class (lane) axis ---
    m = jnp.max(x, axis=-1, keepdims=True)
    z = x - m
    ez = jnp.exp(z)                                  # the single full-tile EUP pass
    s = jnp.sum(ez, axis=-1, keepdims=True)          # (TB, 1)
    log_preds = z - jnp.log(s)                       # (TB, C)
    p = ez * pl.reciprocal(s, approx=False)          # softmax probs (EUP slot, exact)

    # --- one-hot selection built in-kernel ---
    cls = lax.broadcasted_iota(jnp.int32, (x.shape[0], num_classes), 1)
    is_tgt = cls == tgt                              # (TB, C) bool

    # --- asymmetric focusing weight with label smoothing folded in ---
    #   target class : (1 - eps + eps/C) * (1 - p) ** gamma_pos
    #   others       : (eps/C)           *      p  ** gamma_neg
    pos_coef = jnp.float32(1.0 - eps + eps / num_classes)
    neg_coef = jnp.float32(eps / num_classes)
    if _is_small_int(gamma_pos) and _is_small_int(gamma_neg):
        gp, gn = int(gamma_pos), int(gamma_neg)
        pos_term = pos_coef if gp == 0 else pos_coef * _int_pow(1.0 - p, gp)
        neg_term = neg_coef if gn == 0 else neg_coef * _int_pow(p, gn)
    else:
        # General float gammas: base**g = exp(g*log(base)); returns ~1e-30**g
        # instead of exact 0 at base == 0 (negligible).
        pos_term = pos_coef * jnp.exp(
            jnp.float32(gamma_pos) * jnp.log(jnp.maximum(1.0 - p, 1e-30)))
        neg_term = neg_coef * jnp.exp(
            jnp.float32(gamma_neg) * jnp.log(jnp.maximum(p, 1e-30)))

    coef = jnp.where(is_tgt, pos_term, neg_term)

    # per-sample loss; OOB rows of a ragged last block are dropped on store
    loss_ref[...] = -jnp.sum(coef * log_preds, axis=-1, keepdims=True)  # (TB, 1)


def _choose_block_batch(B, C, itemsize):
    """Pick the batch tile: sublane-aligned, ~1 MiB f32 working set, >=2 grid steps."""
    mult = max(8, 32 // itemsize)        # sublane tile of the packed input dtype
    if B <= mult:
        return B                         # single full-extent block (always legal)
    # ~1 MiB of f32 working set per step: large enough to amortize the ~0.35 us
    # per-step overhead, small enough for every generation's scoped VMEM.
    tb = max(mult, (1 << 20) // (4 * C))
    tb = min(tb, 4096)
    # Guarantee >= 2 grid steps so the "parallel" axis can shard across v7x TCs.
    half = -(-B // 2)
    half = -(-half // mult) * mult
    tb = min(tb, half)
    tb = max(mult, (tb // mult) * mult)
    return tb


def asl_single_label(inputs, target, *, gamma_pos=0.0, gamma_neg=4.0, eps=0.1,
                     reduction="mean"):
    """inputs: (B, C) float (any dtype); target: (B,) int class indices."""
    B, C = inputs.shape
    itemsize = jnp.dtype(inputs.dtype).itemsize
    tgt = target.astype(jnp.int32).reshape(B, 1)      # tiny, (B, 1)

    TB = _choose_block_batch(B, C, itemsize)
    num_tiles = pl.cdiv(B, TB)                        # ragged tail handled in-kernel

    # Explicit VMEM budget: double-buffered input/target/output + f32 temporaries
    # that live around the row reductions (ez, log_preds, p, weight, coef).
    est = (2 * TB * C * itemsize          # input, double-buffered
           + 4 * 2 * TB * 4               # target + output, double-buffered
           + 6 * TB * C * 4)              # f32 elementwise temporaries
    vmem_limit = int(min(max(2 * est, 32 << 20), 100 << 20))

    int_gammas = _is_small_int(gamma_pos) and _is_small_int(gamma_neg)
    cost = pl.CostEstimate(
        flops=14 * B * C,
        transcendentals=(1 if int_gammas else 5) * B * C,
        bytes_accessed=B * C * itemsize + B * 4 + B * 4,
    )

    kernel = functools.partial(_asl_kernel, gamma_pos=gamma_pos,
                               gamma_neg=gamma_neg, eps=eps, num_classes=C)

    per_sample = pl.pallas_call(
        kernel,
        out_shape=jax.ShapeDtypeStruct((B, 1), jnp.float32),
        grid=(num_tiles,),
        in_specs=[
            pl.BlockSpec((TB, C), lambda i: (i, 0)),   # native dtype streamed as-is
            pl.BlockSpec((TB, 1), lambda i: (i, 0)),
        ],
        out_specs=pl.BlockSpec((TB, 1), lambda i: (i, 0)),
        compiler_params=pltpu.CompilerParams(
            dimension_semantics=("parallel",),
            vmem_limit_bytes=vmem_limit,
        ),
        cost_estimate=cost,
    )(inputs, tgt)

    loss = per_sample[:, 0]
    if reduction == "mean":
        return jnp.mean(loss)
    if reduction == "sum":
        return jnp.sum(loss)
    return loss


def _reference(inputs, target, gamma_pos, gamma_neg, eps, reduction):
    """Pure-JAX transcription of the PyTorch forward (for the sanity check)."""
    C = inputs.shape[-1]
    x = inputs.astype(jnp.float32)
    log_preds = jax.nn.log_softmax(x, axis=-1)
    t = jax.nn.one_hot(target, C, dtype=jnp.float32)
    anti = 1.0 - t
    p = jnp.exp(log_preds)
    xs_pos = p * t
    xs_neg = (1.0 - p) * anti
    w = jnp.power(1.0 - xs_pos - xs_neg, gamma_pos * t + gamma_neg * anti)
    lp = log_preds * w
    if eps > 0:
        t = t * (1.0 - eps) + eps / C
    loss = -(t * lp).sum(-1)
    if reduction == "mean":
        return loss.mean()
    if reduction == "sum":
        return loss.sum()
    return loss


if __name__ == "__main__":
    key = jax.random.PRNGKey(0)
    k1, k2, k3, k4 = jax.random.split(key, 4)

    # Case 1: module defaults (gamma_pos=0, gamma_neg=4, eps=0.1), f32, one tile.
    B, C = 8, 32
    x = jax.random.normal(k1, (B, C), dtype=jnp.float32)
    t = jax.random.randint(k2, (B,), 0, C, dtype=jnp.int32)
    out = jax.block_until_ready(asl_single_label(x, t))
    ref = _reference(x, t, 0.0, 4.0, 0.1, "mean")
    assert out.shape == ()
    assert jnp.allclose(out, ref, rtol=1e-5, atol=1e-5), (out, ref)

    # Case 2: ragged batch (B % TB != 0) -> multi-step grid + OOB-dropped tail rows.
    B2, C2 = 20, 32
    x2 = jax.random.normal(k3, (B2, C2), dtype=jnp.float32)
    t2 = jax.random.randint(k4, (B2,), 0, C2, dtype=jnp.int32)
    out2 = jax.block_until_ready(asl_single_label(x2, t2))
    ref2 = _reference(x2, t2, 0.0, 4.0, 0.1, "mean")
    assert jnp.allclose(out2, ref2, rtol=1e-5, atol=1e-5), (out2, ref2)

    # Case 3: native bf16 streaming (no wrapper upcast), eps=0, sum reduction.
    x3 = x.astype(jnp.bfloat16)
    out3 = jax.block_until_ready(asl_single_label(x3, t, eps=0.0, reduction="sum"))
    ref3 = _reference(x3, t, 0.0, 4.0, 0.0, "sum")
    assert jnp.allclose(out3, ref3, rtol=1e-4, atol=1e-4), (out3, ref3)

    print("KERNEL_OK")
</pallas_src>

<mosaic_0001>
module attributes {stable_mosaic.version = 11 : i64} {
  func.func @_asl_kernel(%arg0: i32, %arg1: memref<8x32xf32, #tpu.memory_space<vmem>>, %arg2: memref<8x1xi32, #tpu.memory_space<vmem>>, %arg3: memref<8x1xf32, #tpu.memory_space<vmem>>) attributes {dimension_semantics = [#tpu.dimension_semantics<parallel>], iteration_bounds = array<i64: 1>, scalar_prefetch = 0 : i64, scratch_operands = 0 : i64, tpu.core_type = #tpu.core_type<tc>, window_params = [{transform_indices = @transform_0, window_bounds = array<i64: 8, 32>}, {transform_indices = @transform_1, window_bounds = array<i64: 8, 1>}, {transform_indices = @transform_2, window_bounds = array<i64: 8, 1>}]} {
    %c0 = arith.constant 0 : index
    %c0_0 = arith.constant 0 : index
    %0 = vector.load %arg1[%c0, %c0_0] : memref<8x32xf32, #tpu.memory_space<vmem>>, vector<8x32xf32>
    %c0_1 = arith.constant 0 : index
    %c0_2 = arith.constant 0 : index
    %1 = vector.load %arg2[%c0_1, %c0_2] : memref<8x1xi32, #tpu.memory_space<vmem>>, vector<8x1xi32>
    %cst = arith.constant dense<0xFF800000> : vector<8xf32>
    %2 = vector.multi_reduction <maximumf>, %0, %cst [1] : vector<8x32xf32> to vector<8xf32>
    %3 = vector.shape_cast %2 : vector<8xf32> to vector<8x1xf32>
    %4 = vector.broadcast %3 : vector<8x1xf32> to vector<8x32xf32>
    %5 = arith.subf %0, %4 : vector<8x32xf32>
    %6 = math.exp %5 : vector<8x32xf32>
    %cst_3 = arith.constant dense<0.000000e+00> : vector<8xf32>
    %7 = vector.multi_reduction <add>, %6, %cst_3 [1] : vector<8x32xf32> to vector<8xf32>
    %8 = vector.shape_cast %7 : vector<8xf32> to vector<8x1xf32>
    %9 = math.log %8 : vector<8x1xf32>
    %10 = vector.broadcast %9 : vector<8x1xf32> to vector<8x32xf32>
    %11 = arith.subf %5, %10 : vector<8x32xf32>
    %12 = tpu.reciprocal %8 : vector<8x1xf32> -> vector<8x1xf32>
    %13 = vector.broadcast %12 : vector<8x1xf32> to vector<8x32xf32>
    %14 = arith.mulf %6, %13 : vector<8x32xf32>
    %15 = tpu.iota {dimensions = array<i32: 1>} : vector<8x32xi32>
    %16 = vector.broadcast %1 : vector<8x1xi32> to vector<8x32xi32>
    %17 = arith.cmpi eq, %15, %16 : vector<8x32xi32>
    %18 = arith.mulf %14, %14 : vector<8x32xf32>
    %19 = arith.mulf %18, %18 : vector<8x32xf32>
    %cst_4 = arith.constant 3.125000e-03 : f32
    %20 = vector.broadcast %cst_4 : f32 to vector<8x32xf32>
    %21 = arith.mulf %20, %19 : vector<8x32xf32>
    %cst_5 = arith.constant 0.903124988 : f32
    %22 = vector.broadcast %cst_5 : f32 to vector<8x32xf32>
    %23 = arith.select %17, %22, %21 : vector<8x32xi1>, vector<8x32xf32>
    %24 = arith.mulf %23, %11 : vector<8x32xf32>
    %cst_6 = arith.constant dense<0.000000e+00> : vector<8xf32>
    %25 = vector.multi_reduction <add>, %24, %cst_6 [1] : vector<8x32xf32> to vector<8xf32>
    %26 = vector.shape_cast %25 : vector<8xf32> to vector<8x1xf32>
    %cst_7 = arith.constant 0.000000e+00 : f32
    %27 = vector.broadcast %cst_7 : f32 to vector<8x1xf32>
    %28 = arith.subf %27, %26 : vector<8x1xf32>
    %c0_8 = arith.constant 0 : index
    %c0_9 = arith.constant 0 : index
    %29 = vector.load %arg3[%c0_8, %c0_9] : memref<8x1xf32, #tpu.memory_space<vmem>>, vector<8x1xf32>
    tpu.vector_store %arg3[%c0_8, %c0_9], %28 {strides = array<i32>} : memref<8x1xf32, #tpu.memory_space<vmem>>, vector<8x1xf32>,
    return
  }
  func.func @transform_0(%arg0: i32) -> (i32, i32) {
    %c0_i32 = arith.constant 0 : i32
    %c0_i32_0 = arith.constant 0 : i32
    return %arg0, %c0_i32 : i32, i32
  }
  func.func @transform_1(%arg0: i32) -> (i32, i32) {
    %c0_i32 = arith.constant 0 : i32
    %c0_i32_0 = arith.constant 0 : i32
    return %arg0, %c0_i32 : i32, i32
  }
  func.func @transform_2(%arg0: i32) -> (i32, i32) {
    %c0_i32 = arith.constant 0 : i32
    %c0_i32_0 = arith.constant 0 : i32
    return %arg0, %c0_i32 : i32, i32
  }
}

</mosaic_0001>

<bundles_post_ra>
// kernel: tpu_custom_call.1
= control target key start
LH: loop header
LB: loop body
LE: loop exit
PB: predicated region body
PF: predicated region fallthrough
CT: control target
= control target key end

     0   :  { %vm13_vm0 = vcmask 261120   ;;  %v58_v2 = vmov 0   ;;  %v28_v10 = vlaneseq  ;;  %vm43_vm2 = vcmask 7168   ;;  %s86_s0 = inlined_call_operand.vmem [shape: f32[8,32], index: 0, kind: input, shape index: {}]   ;;  %s87_s1 = inlined_call_operand.vmem [shape: s32[8,1], index: 1, kind: input, shape index: {}]   ;;  %s88_s2 = inlined_call_operand.vmem [shape: f32[8,1], index: 2, kind: output, shape index: {}]  }
   0x1   :  { %v11_v0 = vld [vmem:[%s86_s0] sm:$0xff]  ;;  %50 = vset.pattern.permute.xlu1 %v58_v2  ;;  %51 = vset.pattern.permute.xlu0 %v58_v2 }
   0x2   :  { %v14_v1 = vsel %vm13_vm0, %v11_v0, -inf  ;;  %v12_v3 = vld [vmem:[%s87_s1] sm:$0xff]  ;;  %v29_v14 = vand.u32 127, %v28_v10 }
   0x3   :  { %15 = vmax.xlane.f32.xlu0 %v14_v1  ;;  %31 = vperm.xlu1 %50, %v12_v3  }
  0x82   :  { %v32_v15 = vpop.permute.xlu1 %31 }
  0x83   :  { %vm33_vm1 = vcmp.eq.s32.totalorder %v29_v14, %v32_v15 }
  0x90   :  { %v16_v4 = vpop.xlane.xlu0 %15 }
  0x91   :  { %v17_v5 = vsub.f32 %v11_v0, %v16_v4 }
  0x93   :  { %v18_v6 = vmul.f32 1.442695, %v17_v5 }
  0x95   :  { %52 = vpow2.f32 %v18_v6 }
  0x9f   :  { %v53_v7 = vpop.eup %52 }
  0xa0   :  { %v20_v8 = vsel %vm13_vm0, %v53_v7, 0.0 }
  0xa1   :  { %21 = vadd.xlane.f32.xlu0 %v20_v8 }
 0x12e   :  { %v22_v9 = vpop.xlane.xlu0 %21 }
 0x12f   :  { %54 = vrcp.f32 %v22_v9 }
 0x130   :  { %56 = vlog2.f32 %v22_v9 }
 0x139   :  { %v55_v11 = vpop.eup %54 }
 0x13a   :  { %v57_v12 = vpop.eup %56  ;;  %v27_v13 = vmul.f32 %v55_v11, %v53_v7 }
 0x13b   :  { %v24_v17 = vmul.f32 0.6931472, %v57_v12 }
 0x13c   :  { %v34_v16 = vmul.f32 %v27_v13, %v27_v13 }
 0x13d   :  { %v25_v20 = vsub.f32 %v17_v5, %v24_v17 }
 0x13e   :  { %v35_v18 = vmul.f32 %v34_v16, %v34_v16 }
 0x140   :  { %v36_v19 = vmul.f32 0.003125, %v35_v18 }
 0x142   :  { %v37_v21 = vsel %vm33_vm1, 0.903125, %v36_v19 }
 0x143   :  { %v38_v22 = vmul.f32 %v37_v21, %v25_v20 }
 0x145   :  { %v39_v23 = vsel %vm13_vm0, %v38_v22, 0.0 }
 0x146   :  { %40 = vadd.xlane.f32.xlu1 %v39_v23 }
 0x1d3   :  { %v41_v24 = vpop.xlane.xlu1 %40 }
 0x1d4   :  { %v42_v25 = vsub.f32 0.0, %v41_v24 }
 0x1d6   :  { %44 = vst.msk [vmem:[%s88_s2] sm:$0xff] %vm43_vm2, %v42_v25 }

</bundles_post_ra>
